<compile_context>
chip_gen: v7x
topology: tpu7x:2x2x1
jax: 0.10.0
libtpu: 0.0.40
codegen_flags: <defaults>
</compile_context>

<pallas_src>
import functools

import jax
import jax.numpy as jnp
from jax import lax
from jax.experimental import pallas as pl
from jax.experimental.pallas import tpu as pltpu


def _num_tensorcores():
    """Best-effort TensorCore count for the leading 'parallel' chunk axis."""
    try:
        dev = jax.devices()[0]
    except Exception:
        return 1
    for attr in ("num_cores", "core_count"):
        v = getattr(dev, attr, None)
        if isinstance(v, int) and v > 0:
            return int(v)
    kind = str(getattr(dev, "device_kind", "")).lower()
    if "v7" in kind:
        return 2
    return 1


# -----------------------------------------------------------------------------
# Kernel 1: sum of squared magnitudes of rfft2(F_s - F_t), norm='ortho',
# via Parseval + Hermitian symmetry on a lane-dense packed view.
# -----------------------------------------------------------------------------
def _fft_parseval_kernel(fs_ref, ft_ref, coef_ref, out_ref, acc_d, acc_y, *,
                         rows_total, tiles_per_chunk):
    c = pl.program_id(0)          # parallel chunk (2 TCs on v7x; size 1 elsewhere)
    i = pl.program_id(1)          # reduction over packed-row tiles

    @pl.when(i == 0)
    def _():
        acc_d[...] = jnp.zeros_like(acc_d)
        acc_y[...] = jnp.zeros_like(acc_y)

    rows_tile = fs_ref.shape[0]
    row0 = (c * tiles_per_chunk + i) * rows_tile       # logical (unclamped) tile
    row_ids = row0 + lax.broadcasted_iota(jnp.int32, (rows_tile, 1), 0)
    valid = row_ids < rows_total                       # mask tail / duplicated tiles

    # fused student - teacher diff, lane-dense (rows_tile, P)
    d = fs_ref[...].astype(jnp.float32) - ft_ref[...].astype(jnp.float32)
    d = jnp.where(valid, d, 0.0)

    # per-W-row [sum | alt-sign sum] / sqrt(W): one small MXU pass, K = P
    y = jnp.dot(d, coef_ref[...], preferred_element_type=jnp.float32)

    def _fold(x):
        r, cols = x.shape
        if r % 8 == 0 and r > 8:
            # sublane-group fold: pure VPU adds, keeps the cross-lane reduce
            # out of the inner loop
            return x.reshape(r // 8, 8, cols).sum(axis=0)
        return x

    acc_d[...] += _fold(d * d)
    acc_y[...] += _fold(y * y)

    @pl.when(i == pl.num_programs(1) - 1)
    def _():
        total = jnp.sum(acc_d[...]) + jnp.sum(acc_y[...])
        out_ref[...] = total + jnp.zeros_like(out_ref)


def _adaptive_channel_pool(F_t, C_s):
    """adaptive_avg_pool3d(F_t, (C_s, None, None)): pool only the channel axis."""
    B, C_t, H, W = F_t.shape
    if C_t == C_s:
        return F_t
    if C_t % C_s == 0:
        return F_t.reshape(B, C_s, C_t // C_s, H, W).mean(axis=2)
    chunks = []
    for i in range(C_s):                      # static bins, plain-JAX glue
        lo = (i * C_t) // C_s
        hi = ((i + 1) * C_t + C_s - 1) // C_s
        chunks.append(F_t[:, lo:hi].mean(axis=1, keepdims=True))
    return jnp.concatenate(chunks, axis=1)


def layer_fft_loss(F_s, F_t):
    """Pallas equivalent of layer_fft_loss (torch.fft.rfft2 + MSE, norm='ortho').

    Exact via Parseval + Hermitian symmetry of the W-direction real DFT; the
    ortho H-direction DFT is unitary and never materialized.
    """
    B, C_s, H, W = F_s.shape
    if F_s.shape[1] < F_t.shape[1]:
        F_t = _adaptive_channel_pool(F_t, C_s)
    if F_t.shape != F_s.shape:
        raise NotImplementedError("mismatched student/teacher feature shapes")

    Wr = W // 2 + 1
    rows = B * C_s * H

    # pack g consecutive W-rows into one lane-dense packed row of width P = g*W
    g = 1
    if W < 128 and 128 % W == 0:
        g = 128 // W
        while g > 1 and rows % g != 0:        # keep the reshape free (exact split)
            g //= 2
    P = g * W
    rows2 = rows // g
    fs = F_s.reshape(rows2, P)                # contiguous -> free reshapes
    ft = F_t.reshape(rows2, P)

    # block-diagonal [per-group ones | per-group alt-sign] / sqrt(W), lane-padded
    include_nyquist = (W % 2 == 0)
    n_cols = 2 * g if include_nyquist else g
    n_out = ((n_cols + 127) // 128) * 128
    r_idx = jnp.arange(P)
    grp = r_idx // W
    w_in = r_idx % W
    cols = jnp.arange(n_out)
    coef = (cols[None, :] == grp[:, None]).astype(jnp.float32)
    if include_nyquist:
        sign = jnp.where(w_in % 2 == 0, 1.0, -1.0).astype(jnp.float32)
        coef = coef + (cols[None, :] == (grp[:, None] + g)).astype(jnp.float32) * sign[:, None]
    coef = coef * (1.0 / jnp.sqrt(jnp.float32(W)))

    # tile sizing: VMEM per pipeline buffer = rows_tile * roundup(P,128) * 4 B
    lane_bytes = ((P + 127) // 128) * 128 * 4
    rt = max(8, min(4096, (4 << 20) // lane_bytes))
    rt -= rt % 8
    rows_tile = rows2 if rows2 <= rt else rt
    n_tiles = pl.cdiv(rows2, rows_tile)

    num_tc = _num_tensorcores()
    num_chunks = num_tc if (num_tc > 1 and n_tiles >= num_tc) else 1
    tiles_per_chunk = pl.cdiv(n_tiles, num_chunks)
    acc_rows = 8 if (rows_tile % 8 == 0 and rows_tile >= 8) else rows_tile

    def _row_map(c, i):
        # clamp overhang block index; overhang tiles are fully masked in-kernel
        return (jnp.minimum(c * tiles_per_chunk + i, n_tiles - 1), 0)

    kernel = functools.partial(_fft_parseval_kernel, rows_total=rows2,
                               tiles_per_chunk=tiles_per_chunk)

    partials = pl.pallas_call(
        kernel,
        out_shape=jax.ShapeDtypeStruct((num_chunks, 1, 1), jnp.float32),
        grid=(num_chunks, tiles_per_chunk),
        in_specs=[
            pl.BlockSpec((rows_tile, P), _row_map),
            pl.BlockSpec((rows_tile, P), _row_map),
            pl.BlockSpec((P, n_out), lambda c, i: (0, 0)),
        ],
        out_specs=pl.BlockSpec((1, 1, 1), lambda c, i: (c, 0, 0)),
        scratch_shapes=[pltpu.VMEM((acc_rows, P), jnp.float32),
                        pltpu.VMEM((acc_rows, n_out), jnp.float32)],
        compiler_params=pltpu.CompilerParams(
            dimension_semantics=("parallel", "arbitrary"),
            vmem_limit_bytes=32 * 1024 * 1024),
    )(fs, ft, coef)

    # MSE over stacked real/imag of rfft2: numel = rows * Wr * 2
    denom = jnp.float32(rows * Wr * 2)
    return jnp.sum(partials) / (2.0 * denom)


def fft_loss(block_outs_s, block_outs_t):
    # TODO(synk): layers could be concatenated (packed width is 128 for all
    # W | 128) into one pallas_call with per-tile coef/scale via scalar
    # prefetch to amortize launch/pipeline-ramp cost.
    losses = [layer_fft_loss(fs, ft) for fs, ft in zip(block_outs_s, block_outs_t)]
    return sum(losses) / len(losses)


# -----------------------------------------------------------------------------
# Kernel 2: logit-level losses, batch-tiled with in-kernel one-hots.
#   base : cross-entropy(student_logits, labels)
#   soft : kl_div(log_softmax(s/T), log_softmax(t/T), log_target, batchmean)*T^2
#   hard : cross-entropy(student_logits, argmax(teacher_logits))
# Raw per-chunk sums are produced; normalization / T^2 scaling happens in XLA.
# -----------------------------------------------------------------------------
def _logit_losses_kernel(s_ref, t_ref, lab_ref, base_ref, soft_ref, hard_ref,
                         base_acc, soft_acc, hard_acc, *,
                         tau, batch_total, tiles_per_chunk):
    c = pl.program_id(0)
    i = pl.program_id(1)

    @pl.when(i == 0)
    def _():
        base_acc[...] = jnp.zeros_like(base_acc)
        soft_acc[...] = jnp.zeros_like(soft_acc)
        hard_acc[...] = jnp.zeros_like(hard_acc)

    s = s_ref[...].astype(jnp.float32)            # (bt, nc)
    t = t_ref[...].astype(jnp.float32)
    lab = lab_ref[...]                            # (bt, 1) int32
    bt, nc = s.shape

    row = (c * tiles_per_chunk + i) * bt + lax.broadcasted_iota(jnp.int32, (bt, 1), 0)
    valid = row < batch_total                     # mask tail / duplicated tiles
    col = lax.broadcasted_iota(jnp.int32, (bt, nc), 1)

    # student log-softmax at T=1 (shared by base CE and hard CE)
    m1 = jnp.max(s, axis=1, keepdims=True)
    z1 = s - m1
    ls = z1 - jnp.log(jnp.sum(jnp.exp(z1), axis=1, keepdims=True))
    base_row = -jnp.sum(jnp.where(col == lab, ls, 0.0), axis=1, keepdims=True)

    # teacher argmax = first index attaining the row max (matches torch.argmax)
    tmax = jnp.max(t, axis=1, keepdims=True)
    t_arg = jnp.min(jnp.where(t == tmax, col, nc), axis=1, keepdims=True)
    hard_row = -jnp.sum(jnp.where(col == t_arg, ls, 0.0), axis=1, keepdims=True)

    # tempered log-softmaxes; maxes reused (max(x/T) = max(x)/T), and the
    # teacher softmax reuses exp(zt) instead of a fourth exp pass (EUP relief)
    inv_tau = 1.0 / tau
    zs = z1 * inv_tau
    ls_s = zs - jnp.log(jnp.sum(jnp.exp(zs), axis=1, keepdims=True))
    zt = (t - tmax) * inv_tau
    et = jnp.exp(zt)
    st = jnp.sum(et, axis=1, keepdims=True)
    ls_t = zt - jnp.log(st)
    p_t = et / st
    soft_row = jnp.sum(p_t * (ls_t - ls_s), axis=1, keepdims=True)

    def _fold(x):
        if bt % 8 == 0 and bt > 8:
            return x.reshape(bt // 8, 8, 1).sum(axis=0)
        return x

    base_acc[...] += _fold(jnp.where(valid, base_row, 0.0))
    soft_acc[...] += _fold(jnp.where(valid, soft_row, 0.0))
    hard_acc[...] += _fold(jnp.where(valid, hard_row, 0.0))

    @pl.when(i == pl.num_programs(1) - 1)
    def _():
        base_ref[...] = jnp.sum(base_acc[...]) + jnp.zeros_like(base_ref)
        soft_ref[...] = jnp.sum(soft_acc[...]) + jnp.zeros_like(soft_ref)
        hard_ref[...] = jnp.sum(hard_acc[...]) + jnp.zeros_like(hard_ref)


def _logit_losses(student_logits, teacher_logits, labels, tau):
    B, n_classes = student_logits.shape
    labels2d = labels.astype(jnp.int32).reshape(B, 1)

    # TODO(synk): for vocab-scale n_classes, tile the class axis with an online
    # logsumexp (flash-softmax style) instead of shrinking the batch tile.
    lane_bytes = ((n_classes + 127) // 128) * 128 * 4
    bt = max(8, min(1024, (4 << 20) // lane_bytes))
    bt -= bt % 8
    b_tile = B if B <= bt else bt
    n_tiles = pl.cdiv(B, b_tile)

    num_tc = _num_tensorcores()
    num_chunks = num_tc if (num_tc > 1 and n_tiles >= num_tc) else 1
    tiles_per_chunk = pl.cdiv(n_tiles, num_chunks)
    acc_rows = 8 if (b_tile % 8 == 0 and b_tile >= 8) else b_tile

    def _map(c, i):
        return (jnp.minimum(c * tiles_per_chunk + i, n_tiles - 1), 0)

    part = jax.ShapeDtypeStruct((num_chunks, 1, 1), jnp.float32)
    base_p, soft_p, hard_p = pl.pallas_call(
        functools.partial(_logit_losses_kernel, tau=float(tau),
                          batch_total=B, tiles_per_chunk=tiles_per_chunk),
        out_shape=(part, part, part),
        grid=(num_chunks, tiles_per_chunk),
        in_specs=[
            pl.BlockSpec((b_tile, n_classes), _map),
            pl.BlockSpec((b_tile, n_classes), _map),
            pl.BlockSpec((b_tile, 1), _map),
        ],
        out_specs=(pl.BlockSpec((1, 1, 1), lambda c, i: (c, 0, 0)),) * 3,
        scratch_shapes=[pltpu.VMEM((acc_rows, 1), jnp.float32)] * 3,
        compiler_params=pltpu.CompilerParams(
            dimension_semantics=("parallel", "arbitrary"),
            vmem_limit_bytes=32 * 1024 * 1024),
    )(student_logits, teacher_logits, labels2d)     # native dtype; upcast in-kernel

    inv_b = 1.0 / B
    base = jnp.sum(base_p) * inv_b
    soft = jnp.sum(soft_p) * inv_b * (float(tau) * float(tau))   # batchmean * T^2
    hard = jnp.sum(hard_p) * inv_b
    return base, soft, hard


# -----------------------------------------------------------------------------
# Synthetic deterministic teacher (plain-JAX glue standing in for the frozen
# teacher_model; its weights are initialized in-script).
# -----------------------------------------------------------------------------
def _init_teacher_params(num_classes, c_in, c_mid):
    k1, k2, k3 = jax.random.split(jax.random.PRNGKey(42), 3)
    return dict(
        w1=0.2 * jax.random.normal(k1, (c_in, c_mid), jnp.float32),
        w2=0.2 * jax.random.normal(k2, (c_mid, c_in), jnp.float32),
        w_cls=0.2 * jax.random.normal(k3, (c_in, num_classes), jnp.float32),
    )


def teacher_model(params, inputs, layer_ids_t):
    # block 0: channel-mixed map (B, c_mid, H, W)
    f1 = jax.nn.relu(jnp.einsum('bchw,cd->bdhw', inputs, params['w1']))
    b, cm, h, w = f1.shape
    # block 1: 2x2 avg-pool + channel mix (B, c_in, H/2, W/2)
    f1p = f1.reshape(b, cm, h // 2, 2, w // 2, 2).mean(axis=(3, 5))
    f2 = jax.nn.relu(jnp.einsum('bchw,cd->bdhw', f1p, params['w2']))
    logits = jnp.mean(f2, axis=(2, 3)) @ params['w_cls']
    blocks = [f1, f2]
    return logits, [blocks[i] for i in layer_ids_t]


# -----------------------------------------------------------------------------
# DistillationLoss (forward-pass semantics of the PyTorch module)
# -----------------------------------------------------------------------------
class DistillationLoss:
    def __init__(self, teacher_params, distillation_type, tau,
                 s_id, t_id, alpha, beta, w_fft):
        assert distillation_type in ['none', 'fft', 'soft', 'hard']
        self.teacher_params = teacher_params
        self.distillation_type = distillation_type
        self.tau = tau
        self.layer_ids_s = s_id
        self.layer_ids_t = t_id
        self.alpha = alpha
        self.beta = beta
        self.w_fft = w_fft

    def __call__(self, inputs, outputs, labels):
        student_outputs = outputs[0]
        block_outs_s = outputs[1]

        if self.distillation_type == 'none':
            base, _, _ = _logit_losses(student_outputs, student_outputs,
                                       labels, self.tau)
            return base

        teacher_outputs, block_outs_t = teacher_model(
            self.teacher_params, inputs, self.layer_ids_t)

        base, soft_kl, hard_ce = _logit_losses(
            student_outputs, teacher_outputs, labels, self.tau)

        loss_base = (1.0 - self.alpha) * base
        loss_fft = self.beta * self.w_fft * fft_loss(block_outs_s, block_outs_t)

        if self.distillation_type == 'fft':
            return (loss_base, loss_fft)
        if self.distillation_type == 'soft':
            distillation_loss = soft_kl
        else:  # 'hard'
            distillation_loss = hard_ce
        loss_dist = self.alpha * distillation_loss
        return (loss_base, loss_fft, loss_dist)


if __name__ == "__main__":
    key = jax.random.PRNGKey(0)
    kx, ks, kb1, kb2, kl_ = jax.random.split(key, 5)

    B, C, H, W, num_classes = 2, 4, 16, 16, 32
    inputs = jax.random.normal(kx, (B, C, H, W), jnp.float32)
    student_logits = jax.random.normal(ks, (B, num_classes), jnp.float32)
    block_outs_s = [
        jax.random.normal(kb1, (B, 4, 16, 16), jnp.float32),
        jax.random.normal(kb2, (B, 4, 8, 8), jnp.float32),
    ]
    labels = jax.random.randint(kl_, (B,), 0, num_classes)

    teacher_params = _init_teacher_params(num_classes=num_classes, c_in=C, c_mid=8)
    criterion = DistillationLoss(
        teacher_params, distillation_type='soft', tau=2.0,
        s_id=[0, 1], t_id=[0, 1], alpha=0.5, beta=1.0, w_fft=1.0)

    out = criterion(inputs, (student_logits, block_outs_s), labels)
    out = jax.block_until_ready(out)
    assert all(bool(jnp.isfinite(o)) for o in out)
    print("KERNEL_OK")
</pallas_src>

<mosaic_0001>
module attributes {stable_mosaic.version = 11 : i64} {
  func.func @_logit_losses_kernel(%arg0: i32, %arg1: i32, %arg2: memref<2x32xf32, #tpu.memory_space<vmem>>, %arg3: memref<2x32xf32, #tpu.memory_space<vmem>>, %arg4: memref<2x1xi32, #tpu.memory_space<vmem>>, %arg5: memref<1x1x1xf32, #tpu.memory_space<vmem>>, %arg6: memref<1x1x1xf32, #tpu.memory_space<vmem>>, %arg7: memref<1x1x1xf32, #tpu.memory_space<vmem>>, %arg8: memref<2x1xf32, #tpu.memory_space<vmem>>, %arg9: memref<2x1xf32, #tpu.memory_space<vmem>>, %arg10: memref<2x1xf32, #tpu.memory_space<vmem>>) attributes {dimension_semantics = [#tpu.dimension_semantics<parallel>, #tpu.dimension_semantics<arbitrary>], iteration_bounds = array<i64: 1, 1>, scalar_prefetch = 0 : i64, scratch_operands = 3 : i64, tpu.core_type = #tpu.core_type<tc>, window_params = [{transform_indices = @transform_0, window_bounds = array<i64: 2, 32>}, {transform_indices = @transform_1, window_bounds = array<i64: 2, 32>}, {transform_indices = @transform_2, window_bounds = array<i64: 2, 1>}, {transform_indices = @transform_3, window_bounds = array<i64: 1, 1, 1>}, {transform_indices = @transform_4, window_bounds = array<i64: 1, 1, 1>}, {transform_indices = @transform_5, window_bounds = array<i64: 1, 1, 1>}]} {
    %c0_i32 = arith.constant 0 : i32
    %0 = arith.cmpi eq, %arg1, %c0_i32 : i32
    %1 = arith.extui %0 : i1 to i32
    %c0_i32_0 = arith.constant 0 : i32
    %2 = arith.cmpi ne, %1, %c0_i32_0 : i32
    scf.if %2 {
      %cst_38 = arith.constant 0.000000e+00 : f32
      %91 = vector.broadcast %cst_38 : f32 to vector<2x1xf32>
      %c0_39 = arith.constant 0 : index
      %c0_40 = arith.constant 0 : index
      %92 = vector.load %arg8[%c0_39, %c0_40] : memref<2x1xf32, #tpu.memory_space<vmem>>, vector<2x1xf32>
      tpu.vector_store %arg8[%c0_39, %c0_40], %91 {strides = array<i32>} : memref<2x1xf32, #tpu.memory_space<vmem>>, vector<2x1xf32>,
      %cst_41 = arith.constant 0.000000e+00 : f32
      %93 = vector.broadcast %cst_41 : f32 to vector<2x1xf32>
      %c0_42 = arith.constant 0 : index
      %c0_43 = arith.constant 0 : index
      %94 = vector.load %arg9[%c0_42, %c0_43] : memref<2x1xf32, #tpu.memory_space<vmem>>, vector<2x1xf32>
      tpu.vector_store %arg9[%c0_42, %c0_43], %93 {strides = array<i32>} : memref<2x1xf32, #tpu.memory_space<vmem>>, vector<2x1xf32>,
      %cst_44 = arith.constant 0.000000e+00 : f32
      %95 = vector.broadcast %cst_44 : f32 to vector<2x1xf32>
      %c0_45 = arith.constant 0 : index
      %c0_46 = arith.constant 0 : index
      %96 = vector.load %arg10[%c0_45, %c0_46] : memref<2x1xf32, #tpu.memory_space<vmem>>, vector<2x1xf32>
      tpu.vector_store %arg10[%c0_45, %c0_46], %95 {strides = array<i32>} : memref<2x1xf32, #tpu.memory_space<vmem>>, vector<2x1xf32>,
    } else {
    }
    %c0 = arith.constant 0 : index
    %c0_1 = arith.constant 0 : index
    %3 = vector.load %arg2[%c0, %c0_1] : memref<2x32xf32, #tpu.memory_space<vmem>>, vector<2x32xf32>
    %c0_2 = arith.constant 0 : index
    %c0_3 = arith.constant 0 : index
    %4 = vector.load %arg3[%c0_2, %c0_3] : memref<2x32xf32, #tpu.memory_space<vmem>>, vector<2x32xf32>
    %c0_4 = arith.constant 0 : index
    %c0_5 = arith.constant 0 : index
    %5 = vector.load %arg4[%c0_4, %c0_5] : memref<2x1xi32, #tpu.memory_space<vmem>>, vector<2x1xi32>
    %c1_i32 = arith.constant 1 : i32
    %6 = arith.muli %arg0, %c1_i32 : i32
    %7 = arith.addi %6, %arg1 : i32
    %c2_i32 = arith.constant 2 : i32
    %8 = arith.muli %7, %c2_i32 : i32
    %9 = tpu.iota {dimensions = array<i32: 0>} : vector<2x1xi32>
    %10 = vector.broadcast %8 : i32 to vector<2x1xi32>
    %11 = arith.addi %10, %9 : vector<2x1xi32>
    %c2_i32_6 = arith.constant 2 : i32
    %12 = vector.broadcast %c2_i32_6 : i32 to vector<2x1xi32>
    %13 = arith.cmpi slt, %11, %12 : vector<2x1xi32>
    %14 = tpu.iota {dimensions = array<i32: 1>} : vector<2x32xi32>
    %cst = arith.constant dense<0xFF800000> : vector<2xf32>
    %15 = vector.multi_reduction <maximumf>, %3, %cst [1] : vector<2x32xf32> to vector<2xf32>
    %16 = vector.shape_cast %15 : vector<2xf32> to vector<2x1xf32>
    %17 = vector.broadcast %16 : vector<2x1xf32> to vector<2x32xf32>
    %18 = arith.subf %3, %17 : vector<2x32xf32>
    %19 = math.exp %18 : vector<2x32xf32>
    %cst_7 = arith.constant dense<0.000000e+00> : vector<2xf32>
    %20 = vector.multi_reduction <add>, %19, %cst_7 [1] : vector<2x32xf32> to vector<2xf32>
    %21 = vector.shape_cast %20 : vector<2xf32> to vector<2x1xf32>
    %22 = math.log %21 : vector<2x1xf32>
    %23 = vector.broadcast %22 : vector<2x1xf32> to vector<2x32xf32>
    %24 = arith.subf %18, %23 : vector<2x32xf32>
    %25 = vector.broadcast %5 : vector<2x1xi32> to vector<2x32xi32>
    %26 = arith.cmpi eq, %14, %25 : vector<2x32xi32>
    %cst_8 = arith.constant 0.000000e+00 : f32
    %27 = vector.broadcast %cst_8 : f32 to vector<2x32xf32>
    %28 = arith.select %26, %24, %27 : vector<2x32xi1>, vector<2x32xf32>
    %cst_9 = arith.constant dense<0.000000e+00> : vector<2xf32>
    %29 = vector.multi_reduction <add>, %28, %cst_9 [1] : vector<2x32xf32> to vector<2xf32>
    %30 = vector.shape_cast %29 : vector<2xf32> to vector<2x1xf32>
    %cst_10 = arith.constant 0.000000e+00 : f32
    %31 = vector.broadcast %cst_10 : f32 to vector<2x1xf32>
    %32 = arith.subf %31, %30 : vector<2x1xf32>
    %cst_11 = arith.constant dense<0xFF800000> : vector<2xf32>
    %33 = vector.multi_reduction <maximumf>, %4, %cst_11 [1] : vector<2x32xf32> to vector<2xf32>
    %34 = vector.shape_cast %33 : vector<2xf32> to vector<2x1xf32>
    %35 = vector.broadcast %34 : vector<2x1xf32> to vector<2x32xf32>
    %36 = arith.cmpf oeq, %4, %35 : vector<2x32xf32>
    %c32_i32 = arith.constant 32 : i32
    %37 = vector.broadcast %c32_i32 : i32 to vector<2x32xi32>
    %38 = arith.select %36, %14, %37 : vector<2x32xi1>, vector<2x32xi32>
    %cst_12 = arith.constant dense<2147483647> : vector<2xi32>
    %39 = vector.multi_reduction <minsi>, %38, %cst_12 [1] : vector<2x32xi32> to vector<2xi32>
    %40 = vector.shape_cast %39 : vector<2xi32> to vector<2x1xi32>
    %41 = vector.broadcast %40 : vector<2x1xi32> to vector<2x32xi32>
    %42 = arith.cmpi eq, %14, %41 : vector<2x32xi32>
    %cst_13 = arith.constant 0.000000e+00 : f32
    %43 = vector.broadcast %cst_13 : f32 to vector<2x32xf32>
    %44 = arith.select %42, %24, %43 : vector<2x32xi1>, vector<2x32xf32>
    %cst_14 = arith.constant dense<0.000000e+00> : vector<2xf32>
    %45 = vector.multi_reduction <add>, %44, %cst_14 [1] : vector<2x32xf32> to vector<2xf32>
    %46 = vector.shape_cast %45 : vector<2xf32> to vector<2x1xf32>
    %cst_15 = arith.constant 0.000000e+00 : f32
    %47 = vector.broadcast %cst_15 : f32 to vector<2x1xf32>
    %48 = arith.subf %47, %46 : vector<2x1xf32>
    %cst_16 = arith.constant 5.000000e-01 : f32
    %49 = vector.broadcast %cst_16 : f32 to vector<2x32xf32>
    %50 = arith.mulf %18, %49 : vector<2x32xf32>
    %51 = math.exp %50 : vector<2x32xf32>
    %cst_17 = arith.constant dense<0.000000e+00> : vector<2xf32>
    %52 = vector.multi_reduction <add>, %51, %cst_17 [1] : vector<2x32xf32> to vector<2xf32>
    %53 = vector.shape_cast %52 : vector<2xf32> to vector<2x1xf32>
    %54 = math.log %53 : vector<2x1xf32>
    %55 = vector.broadcast %54 : vector<2x1xf32> to vector<2x32xf32>
    %56 = arith.subf %50, %55 : vector<2x32xf32>
    %57 = vector.broadcast %34 : vector<2x1xf32> to vector<2x32xf32>
    %58 = arith.subf %4, %57 : vector<2x32xf32>
    %cst_18 = arith.constant 5.000000e-01 : f32
    %59 = vector.broadcast %cst_18 : f32 to vector<2x32xf32>
    %60 = arith.mulf %58, %59 : vector<2x32xf32>
    %61 = math.exp %60 : vector<2x32xf32>
    %cst_19 = arith.constant dense<0.000000e+00> : vector<2xf32>
    %62 = vector.multi_reduction <add>, %61, %cst_19 [1] : vector<2x32xf32> to vector<2xf32>
    %63 = vector.shape_cast %62 : vector<2xf32> to vector<2x1xf32>
    %64 = math.log %63 : vector<2x1xf32>
    %65 = vector.broadcast %64 : vector<2x1xf32> to vector<2x32xf32>
    %66 = arith.subf %60, %65 : vector<2x32xf32>
    %67 = vector.broadcast %63 : vector<2x1xf32> to vector<2x32xf32>
    %68 = arith.divf %61, %67 : vector<2x32xf32>
    %69 = arith.subf %66, %56 : vector<2x32xf32>
    %70 = arith.mulf %68, %69 : vector<2x32xf32>
    %cst_20 = arith.constant dense<0.000000e+00> : vector<2xf32>
    %71 = vector.multi_reduction <add>, %70, %cst_20 [1] : vector<2x32xf32> to vector<2xf32>
    %72 = vector.shape_cast %71 : vector<2xf32> to vector<2x1xf32>
    %c0_21 = arith.constant 0 : index
    %c0_22 = arith.constant 0 : index
    %73 = vector.load %arg8[%c0_21, %c0_22] : memref<2x1xf32, #tpu.memory_space<vmem>>, vector<2x1xf32>
    %cst_23 = arith.constant 0.000000e+00 : f32
    %74 = vector.broadcast %cst_23 : f32 to vector<2x1xf32>
    %75 = arith.select %13, %32, %74 : vector<2x1xi1>, vector<2x1xf32>
    %76 = arith.addf %73, %75 : vector<2x1xf32>
    %c0_24 = arith.constant 0 : index
    %c0_25 = arith.constant 0 : index
    %77 = vector.load %arg8[%c0_24, %c0_25] : memref<2x1xf32, #tpu.memory_space<vmem>>, vector<2x1xf32>
    tpu.vector_store %arg8[%c0_24, %c0_25], %76 {strides = array<i32>} : memref<2x1xf32, #tpu.memory_space<vmem>>, vector<2x1xf32>,
    %c0_26 = arith.constant 0 : index
    %c0_27 = arith.constant 0 : index
    %78 = vector.load %arg9[%c0_26, %c0_27] : memref<2x1xf32, #tpu.memory_space<vmem>>, vector<2x1xf32>
    %cst_28 = arith.constant 0.000000e+00 : f32
    %79 = vector.broadcast %cst_28 : f32 to vector<2x1xf32>
    %80 = arith.select %13, %72, %79 : vector<2x1xi1>, vector<2x1xf32>
    %81 = arith.addf %78, %80 : vector<2x1xf32>
    %c0_29 = arith.constant 0 : index
    %c0_30 = arith.constant 0 : index
    %82 = vector.load %arg9[%c0_29, %c0_30] : memref<2x1xf32, #tpu.memory_space<vmem>>, vector<2x1xf32>
    tpu.vector_store %arg9[%c0_29, %c0_30], %81 {strides = array<i32>} : memref<2x1xf32, #tpu.memory_space<vmem>>, vector<2x1xf32>,
    %c0_31 = arith.constant 0 : index
    %c0_32 = arith.constant 0 : index
    %83 = vector.load %arg10[%c0_31, %c0_32] : memref<2x1xf32, #tpu.memory_space<vmem>>, vector<2x1xf32>
    %cst_33 = arith.constant 0.000000e+00 : f32
    %84 = vector.broadcast %cst_33 : f32 to vector<2x1xf32>
    %85 = arith.select %13, %48, %84 : vector<2x1xi1>, vector<2x1xf32>
    %86 = arith.addf %83, %85 : vector<2x1xf32>
    %c0_34 = arith.constant 0 : index
    %c0_35 = arith.constant 0 : index
    %87 = vector.load %arg10[%c0_34, %c0_35] : memref<2x1xf32, #tpu.memory_space<vmem>>, vector<2x1xf32>
    tpu.vector_store %arg10[%c0_34, %c0_35], %86 {strides = array<i32>} : memref<2x1xf32, #tpu.memory_space<vmem>>, vector<2x1xf32>,
    %c0_i32_36 = arith.constant 0 : i32
    %88 = arith.cmpi eq, %arg1, %c0_i32_36 : i32
    %89 = arith.extui %88 : i1 to i32
    %c0_i32_37 = arith.constant 0 : i32
    %90 = arith.cmpi ne, %89, %c0_i32_37 : i32
    scf.if %90 {
      %c0_38 = arith.constant 0 : index
      %c0_39 = arith.constant 0 : index
      %91 = vector.load %arg8[%c0_38, %c0_39] : memref<2x1xf32, #tpu.memory_space<vmem>>, vector<2x1xf32>
      %92 = vector.shape_cast %91 : vector<2x1xf32> to vector<1x2x1xf32>
      %cst_40 = arith.constant dense<0.000000e+00> : vector<1xf32>
      %93 = vector.multi_reduction <add>, %92, %cst_40 [1, 2] : vector<1x2x1xf32> to vector<1xf32>
      %94 = vector.shape_cast %93 : vector<1xf32> to vector<1x1x1xf32>
      %95 = vector.extract %94[0, 0, 0] : f32 from vector<1x1x1xf32>
      %cst_41 = arith.constant 0.000000e+00 : f32
      %96 = vector.broadcast %cst_41 : f32 to vector<1x1x1xf32>
      %97 = vector.broadcast %95 : f32 to vector<1x1x1xf32>
      %98 = arith.addf %97, %96 : vector<1x1x1xf32>
      %c0_42 = arith.constant 0 : index
      %c0_43 = arith.constant 0 : index
      %c0_44 = arith.constant 0 : index
      %99 = vector.load %arg5[%c0_42, %c0_43, %c0_44] : memref<1x1x1xf32, #tpu.memory_space<vmem>>, vector<1x1x1xf32>
      tpu.vector_store %arg5[%c0_42, %c0_43, %c0_44], %98 {strides = array<i32>} : memref<1x1x1xf32, #tpu.memory_space<vmem>>, vector<1x1x1xf32>,
      %c0_45 = arith.constant 0 : index
      %c0_46 = arith.constant 0 : index
      %100 = vector.load %arg9[%c0_45, %c0_46] : memref<2x1xf32, #tpu.memory_space<vmem>>, vector<2x1xf32>
      %101 = vector.shape_cast %100 : vector<2x1xf32> to vector<1x2x1xf32>
      %cst_47 = arith.constant dense<0.000000e+00> : vector<1xf32>
      %102 = vector.multi_reduction <add>, %101, %cst_47 [1, 2] : vector<1x2x1xf32> to vector<1xf32>
      %103 = vector.shape_cast %102 : vector<1xf32> to vector<1x1x1xf32>
      %104 = vector.extract %103[0, 0, 0] : f32 from vector<1x1x1xf32>
      %cst_48 = arith.constant 0.000000e+00 : f32
      %105 = vector.broadcast %cst_48 : f32 to vector<1x1x1xf32>
      %106 = vector.broadcast %104 : f32 to vector<1x1x1xf32>
      %107 = arith.addf %106, %105 : vector<1x1x1xf32>
      %c0_49 = arith.constant 0 : index
      %c0_50 = arith.constant 0 : index
      %c0_51 = arith.constant 0 : index
      %108 = vector.load %arg6[%c0_49, %c0_50, %c0_51] : memref<1x1x1xf32, #tpu.memory_space<vmem>>, vector<1x1x1xf32>
      tpu.vector_store %arg6[%c0_49, %c0_50, %c0_51], %107 {strides = array<i32>} : memref<1x1x1xf32, #tpu.memory_space<vmem>>, vector<1x1x1xf32>,
      %c0_52 = arith.constant 0 : index
      %c0_53 = arith.constant 0 : index
      %109 = vector.load %arg10[%c0_52, %c0_53] : memref<2x1xf32, #tpu.memory_space<vmem>>, vector<2x1xf32>
      %110 = vector.shape_cast %109 : vector<2x1xf32> to vector<1x2x1xf32>
      %cst_54 = arith.constant dense<0.000000e+00> : vector<1xf32>
      %111 = vector.multi_reduction <add>, %110, %cst_54 [1, 2] : vector<1x2x1xf32> to vector<1xf32>
      %112 = vector.shape_cast %111 : vector<1xf32> to vector<1x1x1xf32>
      %113 = vector.extract %112[0, 0, 0] : f32 from vector<1x1x1xf32>
      %cst_55 = arith.constant 0.000000e+00 : f32
      %114 = vector.broadcast %cst_55 : f32 to vector<1x1x1xf32>
      %115 = vector.broadcast %113 : f32 to vector<1x1x1xf32>
      %116 = arith.addf %115, %114 : vector<1x1x1xf32>
      %c0_56 = arith.constant 0 : index
      %c0_57 = arith.constant 0 : index
      %c0_58 = arith.constant 0 : index
      %117 = vector.load %arg7[%c0_56, %c0_57, %c0_58] : memref<1x1x1xf32, #tpu.memory_space<vmem>>, vector<1x1x1xf32>
      tpu.vector_store %arg7[%c0_56, %c0_57, %c0_58], %116 {strides = array<i32>} : memref<1x1x1xf32, #tpu.memory_space<vmem>>, vector<1x1x1xf32>,
    } else {
    }
    return
  }
  func.func @transform_0(%arg0: i32, %arg1: i32) -> (i32, i32) {
    %c1_i32 = arith.constant 1 : i32
    %0 = arith.muli %arg0, %c1_i32 : i32
    %1 = arith.addi %0, %arg1 : i32
    %c0_i32 = arith.constant 0 : i32
    %2 = arith.minsi %1, %c0_i32 : i32
    %c0_i32_0 = arith.constant 0 : i32
    %c0_i32_1 = arith.constant 0 : i32
    return %2, %c0_i32_0 : i32, i32
  }
  func.func @transform_1(%arg0: i32, %arg1: i32) -> (i32, i32) {
    %c1_i32 = arith.constant 1 : i32
    %0 = arith.muli %arg0, %c1_i32 : i32
    %1 = arith.addi %0, %arg1 : i32
    %c0_i32 = arith.constant 0 : i32
    %2 = arith.minsi %1, %c0_i32 : i32
    %c0_i32_0 = arith.constant 0 : i32
    %c0_i32_1 = arith.constant 0 : i32
    return %2, %c0_i32_0 : i32, i32
  }
  func.func @transform_2(%arg0: i32, %arg1: i32) -> (i32, i32) {
    %c1_i32 = arith.constant 1 : i32
    %0 = arith.muli %arg0, %c1_i32 : i32
    %1 = arith.addi %0, %arg1 : i32
    %c0_i32 = arith.constant 0 : i32
    %2 = arith.minsi %1, %c0_i32 : i32
    %c0_i32_0 = arith.constant 0 : i32
    %c0_i32_1 = arith.constant 0 : i32
    return %2, %c0_i32_0 : i32, i32
  }
  func.func @transform_3(%arg0: i32, %arg1: i32) -> (i32, i32, i32) {
    %c0_i32 = arith.constant 0 : i32
    %c0_i32_0 = arith.constant 0 : i32
    %c0_i32_1 = arith.constant 0 : i32
    return %arg0, %c0_i32, %c0_i32_0 : i32, i32, i32
  }
  func.func @transform_4(%arg0: i32, %arg1: i32) -> (i32, i32, i32) {
    %c0_i32 = arith.constant 0 : i32
    %c0_i32_0 = arith.constant 0 : i32
    %c0_i32_1 = arith.constant 0 : i32
    return %arg0, %c0_i32, %c0_i32_0 : i32, i32, i32
  }
  func.func @transform_5(%arg0: i32, %arg1: i32) -> (i32, i32, i32) {
    %c0_i32 = arith.constant 0 : i32
    %c0_i32_0 = arith.constant 0 : i32
    %c0_i32_1 = arith.constant 0 : i32
    return %arg0, %c0_i32, %c0_i32_0 : i32, i32, i32
  }
}

</mosaic_0001>

<bundles_post_ra>
// kernel: tpu_custom_call.1
= control target key start
LH: loop header
LB: loop body
LE: loop exit
PB: predicated region body
PF: predicated region fallthrough
CT: control target
= control target key end

     0   :  { %11 = vsyncpa [#allocation6], 0  ;;  %vm120_vm0 = vcmask 254976   ;;  %s532_s0 = inlined_call_operand.vmem [shape: f32[2,32], index: 0, kind: input, shape index: {}]   ;;  %s533_s1 = inlined_call_operand.vmem [shape: f32[2,32], index: 1, kind: input, shape index: {}]   ;;  %s534_s2 = inlined_call_operand.vmem [shape: s32[2,1], index: 2, kind: input, shape index: {}]   ;;  %s535_s3 = inlined_call_operand.hbm [shape: f32[1,1,1], index: 3, kind: output, shape index: {0}]   ;;  %s536_s4 = inlined_call_operand.hbm [shape: f32[1,1,1], index: 4, kind: output, shape index: {1}]   ;;  %s537_s5 = inlined_call_operand.hbm [shape: f32[1,1,1], index: 5, kind: output, shape index: {2}]  }
   0x1   :  { %v109_v0 = vld [vmem:[%s533_s1] sm:$0x3] }
   0x2   :  { %v108_v1 = vld [vmem:[%s532_s0] sm:$0x3]  ;;  %v142_v2 = vsel %vm120_vm0, %v109_v0, -inf }
   0x3   :  { %12 = vsyncpa [#allocation8], 0  ;;  %143 = vmax.xlane.f32.xlu0 %v142_v2  ;;  %v121_v3 = vsel %vm120_vm0, %v108_v1, -inf  ;;  %v409_v4 = vmov 0   ;;  %v113_v5 = vlaneseq  ;;  %v110_v26 = vld [vmem:[%s534_s2] sm:$0x3] }
   0x4   :  { %323 = vset.pattern.permute.xlu1 %v409_v4  ;;  %324 = vset.pattern.permute.xlu0 %v409_v4  ;;  %vm104_vm4 = vcmask 1024   ;;  %v410_v39 = vmov 0.0   ;;  %s411_s2 = smov [#allocation5]   ;;  %vm223_vm7 = vcmask 0  }
   0x5   :  { %v453_v6 = vand.u32 127, %v113_v5  ;;  %105 = vst.msk [vmem:[#allocation2] sm:$0x3] %vm104_vm4, %v410_v39  ;;  %106 = vst.msk [vmem:[#allocation3] sm:$0x3] %vm104_vm4, %v410_v39  ;;  %v114_v59 = vshrl.u32 %v113_v5, 7 }
   0x6   :  { %107 = vst.msk [vmem:[#allocation4] sm:$0x3] %vm104_vm4, %v410_v39  ;;  %s259_s22 = sshll.u32 %s411_s2, 4  ;;  %s260_s22 = int_to_ptr.vmem [resolvable:$true] %s259_s22 }
   0x7   :  { %122 = vmax.xlane.f32.xlu0 %v121_v3  ;;  %vm117_vm6 = vcmp.lt.s32.totalorder %v114_v59, 2  ;;  %s339_s24 = scalar_lea.vmem %s260_s22, 16  ;;  %s343_s25 = scalar_lea.vmem %s260_s22, 32 }
   0x8   :  { %p340_p0 = scmp.ne.s32.totalorder %s260_s22, %s339_s24  ;;  %p344_p1 = scmp.lt.s32.totalorder %s260_s22, %s260_s22 }
   0x9   :  { %p345_p2 = scmp.lt.s32.totalorder %s343_s25, %s339_s24 }
   0xb   :  { %p346_p3 = por %p345_p2, %p344_p1 }
   0xc   :  { %v194_v62 = vld [vmem:[#allocation2] sm:$0x3] }
   0xd   :  { %p347_p4 = pnand %p346_p3, %p340_p0 }
  0x90   :  { %v144_v7 = vpop.xlane.xlu0 %143 }
  0x91   :  { %vm145_vm1 = vcmp.eq.f32.partialorder %v109_v0, %v144_v7  ;;  %v177_v8 = vsub.f32 %v109_v0, %v144_v7 }
  0x92   :  { %v146_v9 = vsel %vm145_vm1, %v453_v6, 32 }
  0x93   :  { %v456_v10 = vmul.f32 0.5, %v177_v8  ;;  %v147_v11 = vsel %vm120_vm0, %v146_v9, 2147483647  ;;  %v199_v8 = vld [vmem:[#allocation3] sm:$0x3] }
  0x94   :  { %v123_v12 = vpop.xlane.xlu0 %122  ;;  %v149_v13 = vshra.s32 %v147_v11, 16  ;;  %v148_v27 = vand.u32 65535, %v147_v11 }
  0x95   :  { %v179_v14 = vmul.f32 1.442695, %v456_v10  ;;  %v124_v15 = vsub.f32 %v108_v1, %v123_v12 }
  0x96   :  { %v151_v16 = vcvt.s32.f32 %v149_v13  ;;  %v150_v29 = vcvt.s32.f32 %v148_v27 }
  0x97   :  { %325 = vpow2.f32 %v179_v14  ;;  %v125_v17 = vmul.f32 1.442695, %v124_v15  ;;  %v168_v18 = vmul.f32 0.5, %v124_v15 }
  0x98   :  { %152 = vmin.xlane.f32.xlu1 %v151_v16 }
  0x99   :  { %v169_v19 = vmul.f32 1.442695, %v168_v18  ;;  %327 = vpow2.f32 %v125_v17 }
  0x9b   :  { %329 = vpow2.f32 %v169_v19 }
  0xa1   :  { %v326_v20 = vpop.eup %325 }
  0xa2   :  { %v181_v21 = vsel %vm120_vm0, %v326_v20, 0.0 }
  0xa3   :  { %182 = vadd.xlane.f32.xlu0 %v181_v21  ;;  %v328_v22 = vpop.eup %327 }
  0xa4   :  { %v127_v25 = vsel %vm120_vm0, %v328_v22, 0.0 }
  0xa5   :  { %v330_v23 = vpop.eup %329 }
  0xa6   :  { %v171_v24 = vsel %vm120_vm0, %v330_v23, 0.0 }
  0xa7   :  { %172 = vadd.xlane.f32.xlu1 %v171_v24 }
  0xab   :  { %128 = vadd.xlane.f32.xlu1 %v127_v25 }
  0xbc   :  { %134 = vperm.xlu1 %323, %v110_v26  }
 0x125   :  { %v153_v28 = vpop.xlane.xlu1 %152 }
 0x126   :  { %vm154_vm2 = vcmp.eq.f32.partialorder %v151_v16, %v153_v28  ;;  %v159_v44 = vcvt.f32.s32 %v153_v28 }
 0x127   :  { %v155_v30 = vsel %vm154_vm2, %v150_v29, inf }
 0x128   :  { %156 = vmin.xlane.f32.xlu0 %v155_v30  ;;  %v160_v48 = vshll.u32 %v159_v44, 16 }
 0x130   :  { %v183_v40 = vpop.xlane.xlu0 %182 }
 0x134   :  { %v173_v31 = vpop.xlane.xlu1 %172 }
 0x138   :  { %v129_v32 = vpop.xlane.xlu1 %128 }
 0x139   :  { %331 = vlog2.f32 %v129_v32 }
 0x13a   :  { %333 = vlog2.f32 %v173_v31 }
 0x13b   :  { %335 = vlog2.f32 %v183_v40 }
 0x13c   :  { %v135_v33 = vpop.permute.xlu1 %134  ;;  %337 = vrcp.f32 %v183_v40 }
 0x13d   :  { %vm136_vm3 = vcmp.eq.s32.totalorder %v453_v6, %v135_v33 }
 0x143   :  { %v332_v34 = vpop.eup %331 }
 0x144   :  { %v131_v35 = vmul.f32 0.6931472, %v332_v34  ;;  %v334_v41 = vpop.eup %333 }
 0x145   :  { %v336_v42 = vpop.eup %335  ;;  %v175_v43 = vmul.f32 0.6931472, %v334_v41 }
 0x146   :  { %v132_v36 = vsub.f32 %v124_v15, %v131_v35  ;;  %v185_v45 = vmul.f32 0.6931472, %v336_v42  ;;  %v338_v51 = vpop.eup %337 }
 0x147   :  { %v176_v46 = vsub.f32 %v168_v18, %v175_v43  ;;  %v188_v54 = vmul.f32 %v338_v51, %v326_v20 }
 0x148   :  { %v137_v37 = vsel %vm136_vm3, %v132_v36, 0.0  ;;  %v186_v50 = vsub.f32 %v456_v10, %v185_v45 }
 0x149   :  { %v138_v38 = vsel %vm120_vm0, %v137_v37, 0.0 }
 0x14a   :  { %139 = vadd.xlane.f32.xlu0 %v138_v38  ;;  %v189_v53 = vsub.f32 %v186_v50, %v176_v46 }
 0x14c   :  { %v190_v57 = vmul.f32 %v189_v53, %v188_v54 }
 0x14e   :  { %v191_v58 = vsel %vm120_vm0, %v190_v57, 0.0 }
 0x1b5   :  { %v157_v47 = vpop.xlane.xlu0 %156 }
 0x1b6   :  { %v158_v49 = vcvt.f32.s32 %v157_v47 }
 0x1b8   :  { %v161_v52 = vadd.s32 %v160_v48, %v158_v49 }
 0x1ba   :  { %vm162_vm5 = vcmp.eq.s32.totalorder %v453_v6, %v161_v52  ;;  %v203_v6 = vld [vmem:[#allocation4] sm:$0x3] }
 0x1bb   :  { %v163_v55 = vsel %vm162_vm5, %v132_v36, 0.0 }
 0x1bc   :  { %v164_v56 = vsel %vm120_vm0, %v163_v55, 0.0 }
 0x1bd   :  { %165 = vadd.xlane.f32.xlu0 %v164_v56 }
 0x1c1   :  { %192 = vadd.xlane.f32.xlu0 %v191_v58 }
 0x1d7   :  { %v140_v60 = vpop.xlane.xlu0 %139 }
 0x1d8   :  { %v141_v61 = vsub.f32 0.0, %v140_v60 }
 0x1da   :  { %v195_v63 = vsel %vm117_vm6, %v141_v61, 0.0 }
 0x1db   :  { %v196_v0 = vadd.f32 %v195_v63, %v194_v62 }
 0x1dd   :  { %198 = vst.msk [vmem:[#allocation2] sm:$0x3] %vm104_vm4, %v196_v0 }
 0x1e4   :  { %v210_v1 = vld [vmem:[#allocation2] sm:$0x3] }
 0x1e5   :  { %v211_v2 = vsel %vm104_vm4, %v210_v1, 0.0 }
 0x1e6   :  { %212 = vadd.xlane.f32.xlu0 %v211_v2 }
 0x24a   :  { %v166_v3 = vpop.xlane.xlu0 %165 }
 0x24b   :  { %v167_v4 = vsub.f32 0.0, %v166_v3 }
 0x24d   :  { %v204_v7 = vsel %vm117_vm6, %v167_v4, 0.0 }
 0x24e   :  { %v205_v5 = vadd.f32 %v204_v7, %v203_v6  ;;  %v193_v9 = vpop.xlane.xlu0 %192 }
 0x24f   :  { %v200_v10 = vsel %vm117_vm6, %v193_v9, 0.0 }
 0x250   :  { %206 = vst.msk [vmem:[#allocation4] sm:$0x3] %vm104_vm4, %v205_v5  ;;  %v201_v11 = vadd.f32 %v200_v10, %v199_v8 }
 0x252   :  { %202 = vst.msk [vmem:[#allocation3] sm:$0x3] %vm104_vm4, %v201_v11 }
 0x257   :  { %v239_v12 = vld [vmem:[#allocation4] sm:$0x3] }
 0x258   :  { %v240_v13 = vsel %vm104_vm4, %v239_v12, 0.0 }
 0x259   :  { %241 = vadd.xlane.f32.xlu0 %v240_v13  ;;  %v225_v14 = vld [vmem:[#allocation3] sm:$0x3] }
 0x25a   :  { %v226_v15 = vsel %vm104_vm4, %v225_v14, 0.0 }
 0x25b   :  { %227 = vadd.xlane.f32.xlu1 %v226_v15 }
 0x273   :  { %v213_v16 = vpop.xlane.xlu0 %212 }
 0x274   :  { %v214_v17 = vrot.slane %v213_v16, 4 }
 0x276   :  { %v215_v18 = vadd.f32 %v214_v17, %v213_v16 }
 0x278   :  { %v216_v19 = vrot.slane %v215_v18, 2 }
 0x27a   :  { %v217_v20 = vadd.f32 %v216_v19, %v215_v18 }
 0x27c   :  { %v218_v21 = vrot.slane %v217_v20, 1 }
 0x27e   :  { %v219_v22 = vadd.f32 %v218_v21, %v217_v20 }
 0x280   :  { %312 = vpush %v219_v22 }
 0x2b1   :  { %s313_s23 = spop %312 }
 0x2b2   :  { %v221_v23 = vstv %s313_s23 }
 0x2b3   :  { %224 = vst.msk [vmem:[#allocation5] sm:$0x1] %vm223_vm7, %v221_v23 }
 0x2b4   :  { %350 = shalt.err (!%p347_p4)
}
 0x2b5   :  { %s351_s28 = scalar_lea.hbm %s535_s3, 16 }
 0x2b6   :  { %p352_p5 = scmp.ne.s32.totalorder %s535_s3, %s351_s28  ;;  %p355_p6 = scmp.lt.u32.totalorder %s351_s28, %s535_s3 }
 0x2b8   :  { %p357_p7 = pnand %p355_p6, %p352_p5 }
 0x2ba   :  { %360 = shalt.err (!%p357_p7)
}
 0x2bb   :  { %262 = dma.vmem_to_hbm [thread:$0]  %s260_s22, 16, %s535_s3, [#allocation6]  }
 0x2bc   :  { %s412_s10 = smov [#allocation7]   ;;  %s413_s12 = smov [#allocation9]  }
 0x2bd   :  { %s269_s11 = sshll.u32 %s412_s10, 4  ;;  %s279_s3 = sshll.u32 %s413_s12, 4  ;;  %s270_s11 = int_to_ptr.vmem [resolvable:$true] %s269_s11  ;;  %s498_s3 = int_to_ptr.vmem [resolvable:$true] %s279_s3 }
 0x2be   :  { %s361_s15 = scalar_lea.vmem %s270_s11, 16  ;;  %s365_s16 = scalar_lea.vmem %s270_s11, 32 }
 0x2bf   :  { %p362_p8 = scmp.ne.s32.totalorder %s270_s11, %s361_s15  ;;  %p366_p9 = scmp.lt.s32.totalorder %s270_s11, %s270_s11 }
 0x2c0   :  { %p367_p10 = scmp.lt.s32.totalorder %s365_s16, %s361_s15 }
 0x2c2   :  { %p368_p11 = por %p367_p10, %p366_p9 }
 0x2c4   :  { %p369_p12 = pnand %p368_p11, %p362_p8 }
 0x2e6   :  { %v242_v24 = vpop.xlane.xlu0 %241 }
 0x2e7   :  { %v243_v25 = vrot.slane %v242_v24, 4 }
 0x2e8   :  { %v228_v26 = vpop.xlane.xlu1 %227 }
 0x2e9   :  { %v244_v27 = vadd.f32 %v243_v25, %v242_v24  ;;  %v229_v28 = vrot.slane %v228_v26, 4 }
 0x2eb   :  { %v245_v29 = vrot.slane %v244_v27, 2  ;;  %v230_v30 = vadd.f32 %v229_v28, %v228_v26 }
 0x2ed   :  { %v246_v31 = vadd.f32 %v245_v29, %v244_v27  ;;  %v231_v32 = vrot.slane %v230_v30, 2 }
 0x2ef   :  { %v232_v33 = vadd.f32 %v231_v32, %v230_v30  ;;  %v247_v34 = vrot.slane %v246_v31, 1 }
 0x2f1   :  { %v233_v35 = vrot.slane %v232_v33, 1  ;;  %v248_v37 = vadd.f32 %v247_v34, %v246_v31 }
 0x2f3   :  { %v234_v36 = vadd.f32 %v233_v35, %v232_v33 }
 0x2f5   :  { %314 = vpush %v234_v36 }
 0x2f6   :  { %316 = vpush %v248_v37 }
 0x326   :  { %s315_s13 = spop %314 }
 0x327   :  { %v236_v38 = vstv %s315_s13  ;;  %s317_s14 = spop %316 }
 0x328   :  { %238 = vst.msk [vmem:[#allocation7] sm:$0x1] %vm223_vm7, %v236_v38  ;;  %v250_v39 = vstv %s317_s14 }
 0x329   :  { %252 = vst.msk [vmem:[#allocation9] sm:$0x1] %vm223_vm7, %v250_v39 }
 0x32a   :  { %372 = shalt.err (!%p369_p12)
}
 0x32b   :  { %s373_s19 = scalar_lea.hbm %s536_s4, 16 }
 0x32c   :  { %p374_p13 = scmp.ne.s32.totalorder %s536_s4, %s373_s19  ;;  %p377_p0 = scmp.lt.u32.totalorder %s373_s19, %s536_s4 }
 0x32e   :  { %p379_p1 = pnand %p377_p0, %p374_p13 }
 0x330   :  { %382 = shalt.err (!%p379_p1)
}
 0x331   :  { %272 = dma.vmem_to_hbm [thread:$0]  %s270_s11, 16, %s536_s4, [#allocation8]  }
 0x332   :  { %s383_s23 = scalar_lea.vmem %s498_s3, 16  ;;  %s387_s24 = scalar_lea.vmem %s498_s3, 32 }
 0x333   :  { %p384_p2 = scmp.ne.s32.totalorder %s498_s3, %s383_s23  ;;  %p388_p3 = scmp.lt.s32.totalorder %s498_s3, %s498_s3 }
 0x334   :  { %p389_p4 = scmp.lt.s32.totalorder %s387_s24, %s383_s23 }
 0x336   :  { %p390_p5 = por %p389_p4, %p388_p3 }
 0x338   :  { %p391_p6 = pnand %p390_p5, %p384_p2 }
 0x33a   :  { %394 = shalt.err (!%p391_p6)
}
 0x33b   :  { %s395_s27 = scalar_lea.hbm %s537_s5, 16 }
 0x33c   :  { %p396_p7 = scmp.ne.s32.totalorder %s537_s5, %s395_s27  ;;  %p399_p8 = scmp.lt.u32.totalorder %s395_s27, %s537_s5 }
 0x33e   :  { %p401_p9 = pnand %p399_p8, %p396_p7 }
 0x340   :  { %404 = shalt.err (!%p401_p9)
}
 0x341   :  { %282 = dma.vmem_to_hbm [thread:$0]  %s498_s3, 16, %s537_s5, [#allocation8]  }
 0x342   :  { %405 = dma.done.wait [#allocation6], 16  }
 0x343   :  { %406 = vsyncadd [#allocation6], 4294967280 }
 0x344   :  { %407 = dma.done.wait [#allocation8], 32  }
 0x345   :  { %408 = vsyncadd [#allocation8], 4294967264 }
 0x346   :  { %292 = vsyncpa [#allocation6], 1 }
 0x347   :  { %293 = vsyncpa [#allocation8], 1 }

</bundles_post_ra>
